<compile_context>
chip_gen: v6e
topology: v6e:2x2x1
jax: 0.10.0
libtpu: 0.0.40
codegen_flags: <defaults>
</compile_context>

<pallas_src>
import jax
import jax.numpy as jnp
from jax.experimental import pallas as pl
from jax.experimental.pallas import tpu as pltpu


D_IN, D_HID, D_OUT = 64, 40, 3


def _mlp_kernel(x_ref, w1_ref, b1_ref, w2_ref, b2_ref, o_ref):
    # Layer 1 on the MXU; accumulate in f32 regardless of input dtype.
    h = jnp.dot(x_ref[...], w1_ref[...], preferred_element_type=jnp.float32)
    h = jnp.maximum(h + b1_ref[...], 0.0)            # bias + ReLU in f32 (VPU)
    # Layer 2 on the MXU (cast h to the weight dtype so bf16 path stays bf16).
    o = jnp.dot(h.astype(w2_ref.dtype), w2_ref[...],
                preferred_element_type=jnp.float32)
    o_ref[...] = (o + b2_ref[...]).astype(o_ref.dtype)


def mlp_forward(x, w1, b1, w2, b2, *, tile_b=1024, use_bf16=None,
                small_b_threshold=1024):
    """x: (B, 64); w1: (64, 40); b1: (40,); w2: (40, 3); b2: (3,).

    Returns (B, 3) f32.
    """
    B = x.shape[0]
    b1_2d = b1.reshape(1, D_HID).astype(jnp.float32)
    b2_2d = b2.reshape(1, D_OUT).astype(jnp.float32)

    small_batch = B < small_b_threshold
    if use_bf16 is None:
        use_bf16 = not small_batch   # halve HBM read traffic when it matters
    compute_dtype = jnp.bfloat16 if use_bf16 else jnp.float32
    xc = x.astype(compute_dtype)
    w1c = w1.astype(compute_dtype)
    w2c = w2.astype(compute_dtype)

    if small_batch:
        # Single-block fast path: whole problem in one invocation, no grid.
        # Full-array block shapes satisfy the (8,128) rule trivially.
        return pl.pallas_call(
            _mlp_kernel,
            out_shape=jax.ShapeDtypeStruct((B, D_OUT), jnp.float32),
            in_specs=[
                pl.BlockSpec((B, D_IN), lambda: (0, 0)),
                pl.BlockSpec((D_IN, D_HID), lambda: (0, 0)),
                pl.BlockSpec((1, D_HID), lambda: (0, 0)),
                pl.BlockSpec((D_HID, D_OUT), lambda: (0, 0)),
                pl.BlockSpec((1, D_OUT), lambda: (0, 0)),
            ],
            out_specs=pl.BlockSpec((B, D_OUT), lambda: (0, 0)),
        )(xc, w1c, b1_2d, w2c, b2_2d)

    # Large batch: stream x in (tile_b, 64) tiles; weights/biases resident.
    tile_b = min(tile_b, B)
    assert tile_b % 8 == 0, "tile_b must be a multiple of 8 (sublane rule)"
    grid = (pl.cdiv(B, tile_b),)   # partial last tile is fine: rows independent

    return pl.pallas_call(
        _mlp_kernel,
        out_shape=jax.ShapeDtypeStruct((B, D_OUT), jnp.float32),
        grid_spec=pltpu.PrefetchScalarGridSpec(
            num_scalar_prefetch=0,
            grid=grid,
            in_specs=[
                pl.BlockSpec((tile_b, D_IN), lambda i: (i, 0)),   # streamed
                pl.BlockSpec((D_IN, D_HID), lambda i: (0, 0)),    # resident
                pl.BlockSpec((1, D_HID), lambda i: (0, 0)),       # resident
                pl.BlockSpec((D_HID, D_OUT), lambda i: (0, 0)),   # resident
                pl.BlockSpec((1, D_OUT), lambda i: (0, 0)),       # resident
            ],
            out_specs=pl.BlockSpec((tile_b, D_OUT), lambda i: (i, 0)),
        ),
        compiler_params=pltpu.CompilerParams(
            # Batch rows are independent: shard the grid across both
            # TensorCores on v7x; no-op on single-TC v5e/v6e.
            dimension_semantics=("parallel",),
            # Above the 16/32 MiB scoped defaults, below v7x's 64 MiB physical;
            # leaves headroom for double-buffered x tiles up to ~16K rows.
            vmem_limit_bytes=48 * 1024 * 1024,
        ),
    )(xc, w1c, b1_2d, w2c, b2_2d)


def init_params(key):
    """Deterministic init mirroring nn.Linear's U(-1/sqrt(fan_in), 1/sqrt(fan_in))."""
    k1, k2, k3, k4 = jax.random.split(key, 4)
    bound1 = 1.0 / jnp.sqrt(64.0)
    bound2 = 1.0 / jnp.sqrt(40.0)
    # Stored transposed relative to PyTorch (in, out) so kernel does x @ W.
    w1 = jax.random.uniform(k1, (D_IN, D_HID), jnp.float32, -bound1, bound1)
    b1 = jax.random.uniform(k2, (D_HID,), jnp.float32, -bound1, bound1)
    w2 = jax.random.uniform(k3, (D_HID, D_OUT), jnp.float32, -bound2, bound2)
    b2 = jax.random.uniform(k4, (D_OUT,), jnp.float32, -bound2, bound2)
    return w1, b1, w2, b2


def reference_forward(x, w1, b1, w2, b2):
    h = jnp.maximum(x @ w1 + b1, 0.0)
    return h @ w2 + b2


if __name__ == "__main__":
    key = jax.random.PRNGKey(0)
    kx, kp, kx2 = jax.random.split(key, 3)
    w1, b1, w2, b2 = init_params(kp)

    # --- Small-batch (single block, f32) path: matches the module spec test. ---
    B_small = 8
    x_small = jax.random.normal(kx, (B_small, D_IN), dtype=jnp.float32)
    out_small = jax.block_until_ready(mlp_forward(x_small, w1, b1, w2, b2))
    ref_small = reference_forward(x_small, w1, b1, w2, b2)
    assert out_small.shape == (B_small, D_OUT)
    assert jnp.allclose(out_small, ref_small, atol=1e-5, rtol=1e-5)

    # --- Large-batch (batch-gridded, bf16-streamed) path. ---
    B_large = 2048
    TILE_B = 512   # 4 grid steps: exercises the pipelined / parallel path
    x_large = jax.random.normal(kx2, (B_large, D_IN), dtype=jnp.float32)
    out_large = jax.block_until_ready(
        mlp_forward(x_large, w1, b1, w2, b2, tile_b=TILE_B))
    ref_large = reference_forward(x_large, w1, b1, w2, b2)
    assert out_large.shape == (B_large, D_OUT)
    # bf16 input/weight quantization -> loose tolerance vs the f32 reference.
    assert jnp.allclose(out_large, ref_large, atol=3e-2, rtol=3e-2)

    print("KERNEL_OK")
</pallas_src>

<mosaic_0001>
module attributes {stable_mosaic.version = 11 : i64} {
  func.func @_mlp_kernel(%arg0: memref<8x64xf32, #tpu.memory_space<vmem>>, %arg1: memref<64x40xf32, #tpu.memory_space<vmem>>, %arg2: memref<1x40xf32, #tpu.memory_space<vmem>>, %arg3: memref<40x3xf32, #tpu.memory_space<vmem>>, %arg4: memref<1x3xf32, #tpu.memory_space<vmem>>, %arg5: memref<8x3xf32, #tpu.memory_space<vmem>>) attributes {dimension_semantics = [], scalar_prefetch = 0 : i64, scratch_operands = 0 : i64, tpu.core_type = #tpu.core_type<tc>} {
    %c0 = arith.constant 0 : index
    %c0_0 = arith.constant 0 : index
    %0 = vector.load %arg0[%c0, %c0_0] : memref<8x64xf32, #tpu.memory_space<vmem>>, vector<8x64xf32>
    %c0_1 = arith.constant 0 : index
    %c0_2 = arith.constant 0 : index
    %1 = vector.load %arg1[%c0_1, %c0_2] : memref<64x40xf32, #tpu.memory_space<vmem>>, vector<64x40xf32>
    %cst = arith.constant dense<0.000000e+00> : vector<8x40xf32>
    %2 = tpu.matmul %0, %1, %cst {dimension_numbers = #tpu.dot_dimension_numbers<[1], [0], [0], [1], [0, 0, 1, 1], [], []>} : vector<8x64xf32>, vector<64x40xf32>, vector<8x40xf32> -> vector<8x40xf32>
    %c0_3 = arith.constant 0 : index
    %c0_4 = arith.constant 0 : index
    %3 = vector.load %arg2[%c0_3, %c0_4] : memref<1x40xf32, #tpu.memory_space<vmem>>, vector<1x40xf32>
    %4 = vector.broadcast %3 : vector<1x40xf32> to vector<8x40xf32>
    %5 = arith.addf %2, %4 : vector<8x40xf32>
    %cst_5 = arith.constant 0.000000e+00 : f32
    %6 = vector.broadcast %cst_5 : f32 to vector<8x40xf32>
    %7 = arith.maximumf %5, %6 : vector<8x40xf32>
    %c0_6 = arith.constant 0 : index
    %c0_7 = arith.constant 0 : index
    %8 = vector.load %arg3[%c0_6, %c0_7] : memref<40x3xf32, #tpu.memory_space<vmem>>, vector<40x3xf32>
    %cst_8 = arith.constant dense<0.000000e+00> : vector<8x3xf32>
    %9 = tpu.matmul %7, %8, %cst_8 {dimension_numbers = #tpu.dot_dimension_numbers<[1], [0], [0], [1], [0, 0, 1, 1], [], []>} : vector<8x40xf32>, vector<40x3xf32>, vector<8x3xf32> -> vector<8x3xf32>
    %c0_9 = arith.constant 0 : index
    %c0_10 = arith.constant 0 : index
    %10 = vector.load %arg4[%c0_9, %c0_10] : memref<1x3xf32, #tpu.memory_space<vmem>>, vector<1x3xf32>
    %11 = vector.broadcast %10 : vector<1x3xf32> to vector<8x3xf32>
    %12 = arith.addf %9, %11 : vector<8x3xf32>
    %c0_11 = arith.constant 0 : index
    %c0_12 = arith.constant 0 : index
    %13 = vector.load %arg5[%c0_11, %c0_12] : memref<8x3xf32, #tpu.memory_space<vmem>>, vector<8x3xf32>
    tpu.vector_store %arg5[%c0_11, %c0_12], %12 {strides = array<i32>} : memref<8x3xf32, #tpu.memory_space<vmem>>, vector<8x3xf32>,
    return
  }
}

</mosaic_0001>

<bundles_post_ra>
// kernel: tpu_custom_call.1
= control target key start
LH: loop header
LB: loop body
LE: loop exit
PB: predicated region body
PF: predicated region fallthrough
CT: control target
= control target key end

     0   :  { %v256_v0 = vmov 0.0   ;;  %vm257_vm0 = vmmov 0   ;;  %vm36_vm1 = vcmask 523264   ;;  %vm123_vm2 = vcmask 326656   ;;  %s339_s1 = inlined_call_operand.vmem [shape: f32[64,40], index: 1, kind: input, shape index: {}]   ;;  %s340_s3 = inlined_call_operand.vmem [shape: f32[40,3], index: 3, kind: input, shape index: {}]   ;;  %s341_s0 = inlined_call_operand.vmem [shape: f32[8,64], index: 0, kind: input, shape index: {}]   ;;  %s342_s2 = inlined_call_operand.vmem [shape: f32[1,40], index: 2, kind: input, shape index: {}]   ;;  %s343_s4 = inlined_call_operand.vmem [shape: f32[1,3], index: 4, kind: input, shape index: {}]   ;;  %s344_s5 = inlined_call_operand.vmem [shape: f32[8,3], index: 5, kind: output, shape index: {}]  }
   0x1   :  { %222 = vmatprep.subr.mxu0 %v256_v0  ;;  %v28_v1 = vld [vmem:[%s339_s1 + $0x38] sm:$0xff]  ;;  %v27_v2 = vld [vmem:[%s339_s1 + $0x30] sm:$0xff]  ;;  %238 = vmatprep.mubr.msk.f32.mxu0 %vm257_vm0, %v256_v0  ;;  %v26_v3 = vld [vmem:[%s339_s1 + $0x28] sm:$0xff]  ;;  %vm197_vm3 = vcmask 23552  }
   0x2   :  { %223 = vmatpush3.msra.mxu0 %v28_v1  ;;  %241 = vmatprep.subr.mxu1 %v256_v0  ;;  %v115_v4 = vld [vmem:[%s340_s3 + $0x20] sm:$0xff]  ;;  %v114_v5 = vld [vmem:[%s340_s3 + $0x18] sm:$0xff]  ;;  %v23_v8 = vld [vmem:[%s339_s1 + $0x10] sm:$0xff] }
   0x3   :  { %224 = vmatprep.subr.mxu0 %v256_v0  ;;  %251 = vmatprep.mubr.msk.f32.mxu1 %vm257_vm0, %v256_v0  ;;  %v25_v6 = vld [vmem:[%s339_s1 + $0x20] sm:$0xff]  ;;  %v24_v7 = vld [vmem:[%s339_s1 + $0x18] sm:$0xff]  ;;  %v22_v9 = vld [vmem:[%s339_s1 + $0x8] sm:$0xff] }
   0x4   :  { %225 = vmatpush3.msra.mxu0 %v27_v2  ;;  %242 = vmatpush3.msra.mxu1 %v115_v4  ;;  %v21_v10 = vld [vmem:[%s339_s1] sm:$0xff]  ;;  %v113_v12 = vld [vmem:[%s340_s3 + $0x10] sm:$0xff]  ;;  %v112_v13 = vld [vmem:[%s340_s3 + $0x8] sm:$0xff] }
   0x5   :  { %226 = vmatprep.subr.mxu0 %v256_v0  ;;  %243 = vmatprep.subr.mxu1 %v256_v0  ;;  %v20_v11 = vld [vmem:[%s341_s0] sm:$0xff] }
   0x6   :  { %227 = vmatpush3.msra.mxu0 %v26_v3  ;;  %244 = vmatpush3.msra.mxu1 %v114_v5  ;;  %v111_v14 = vld [vmem:[%s340_s3] sm:$0xff] }
   0x7   :  { %228 = vmatprep.subr.mxu0 %v256_v0  ;;  %245 = vmatprep.subr.mxu1 %v256_v0  ;;  %v203_v15 = vld [vmem:[%s342_s2] ss:$0 sm:$0xff] }
   0x8   :  { %229 = vmatpush3.msra.mxu0 %v25_v6  ;;  %246 = vmatpush3.msra.mxu1 %v113_v12  ;;  %v205_v20 = vld [vmem:[%s343_s4] ss:$0 sm:$0xff] }
   0x9   :  { %230 = vmatprep.subr.mxu0 %v256_v0  ;;  %247 = vmatprep.subr.mxu1 %v256_v0 }
   0xa   :  { %231 = vmatpush3.msra.mxu0 %v24_v7  ;;  %248 = vmatpush3.msra.mxu1 %v112_v13 }
   0xb   :  { %232 = vmatprep.subr.mxu0 %v256_v0  ;;  %249 = vmatprep.subr.mxu1 %v256_v0 }
   0xc   :  { %233 = vmatpush3.msra.mxu0 %v23_v8  ;;  %250 = vmatpush3.msra.mxu1 %v111_v14 }
   0xd   :  { %234 = vmatprep.subr.mxu0 %v256_v0 }
   0xe   :  { %235 = vmatpush3.msra.mxu0 %v22_v9 }
   0xf   :  { %236 = vmatprep.subr.mxu0 %v256_v0 }
  0x10   :  { %237 = vmatpush3.msra.mxu0 %v21_v10 }
  0x11   :  { %239 = vmatmul.mubr.msk.f32.vlgmr.msra.gmra.mxu0 %vm36_vm1, %v20_v11 }
  0xd1   :  { %v106_v16 = vpop.f32.mrf.mxu0 }
  0xd2   :  { %v107_v17 = vadd.f32 %v203_v15, %v106_v16 }
  0xd3   :  { %v240_v18 = vpop.f32.mrf.mxu0 }
  0xd4   :  { %v110_v19 = vmax.f32 %v107_v17, 0.0 }
  0xd6   :  { %252 = vmatmul.mubr.msk.f32.vlgmr.msra.gmra.mxu1 %vm123_vm2, %v110_v19 }
 0x196   :  { %v193_v21 = vpop.f32.mrf.mxu1 }
 0x197   :  { %v194_v22 = vadd.f32 %v205_v20, %v193_v21 }
 0x198   :  { %v253_v23 = vpop.f32.mrf.mxu1 }
 0x199   :  { %198 = vst.msk [vmem:[%s344_s5] sm:$0xff] %vm197_vm3, %v194_v22 }

</bundles_post_ra>
